<compile_context>
chip_gen: v5e
topology: v5e:2x2
jax: 0.10.0
libtpu: 0.0.40
codegen_flags: <defaults>
</compile_context>

<pallas_src>
import functools
from typing import List

import jax
import jax.numpy as jnp
from jax.experimental import pallas as pl
from jax.experimental.pallas import tpu as pltpu

LANE = 128  # last-dim vreg lane tile


def _round_up(x: int, m: int) -> int:
    return ((x + m - 1) // m) * m


# ---------------------------------------------------------------------------
# Pallas kernel: fully fused MLP head
#   [Linear + bias + ReLU] * (L-1)  ->  Linear + bias
#   (Dropout is identity in eval/inference mode.)
#
#   x_ref : (B, K0)        bf16   flattened activations (full-extent block)
#   w_ref : (sum Ki, NP)   bf16   all layer weights stacked along K
#   b_ref : (L, NP)        f32    all biases stacked
#   o_ref : (B, NP)        f32    padded logits
# ---------------------------------------------------------------------------
def _fused_mlp_kernel(x_ref, w_ref, b_ref, o_ref, *, row_offsets):
    n_layers = len(row_offsets) - 1
    b_all = b_ref[...]                                    # (L, NP) f32, ~1 vreg
    h = x_ref[...]                                        # (B, K0) bf16
    for i in range(n_layers):
        w = w_ref[row_offsets[i]:row_offsets[i + 1], :]   # static, 16-aligned slice
        h = jnp.dot(h, w, preferred_element_type=jnp.float32) + b_all[i:i + 1, :]
        if i < n_layers - 1:
            h = jnp.maximum(h, 0.0).astype(jnp.bfloat16)  # ReLU, back to bf16 for MXU
    o_ref[...] = h.astype(o_ref.dtype)


def fused_mlp_pallas(x_bf16: jax.Array, w_all: jax.Array, b_all: jax.Array,
                     row_offsets) -> jax.Array:
    """One gridless pallas_call for the whole padded MLP head."""
    B = x_bf16.shape[0]
    NP = w_all.shape[1]
    vmem = pl.BlockSpec(memory_space=pltpu.MemorySpace.VMEM)
    return pl.pallas_call(
        functools.partial(_fused_mlp_kernel, row_offsets=row_offsets),
        out_shape=jax.ShapeDtypeStruct((B, NP), jnp.float32),
        in_specs=[vmem, vmem, vmem],
        out_specs=vmem,
    )(x_bf16, w_all, b_all)


# ---------------------------------------------------------------------------
# Parameter construction (deterministic, mimics nn.Embedding / nn.Linear init)
# ---------------------------------------------------------------------------
def init_params(key, vocab_size: int, embedding_dim: int,
                hidden_dims: List[int], output_dim: int, seq_len: int):
    params = {}
    key, ek = jax.random.split(key)
    emb = jax.random.normal(ek, (vocab_size, embedding_dim), dtype=jnp.float32)
    emb = emb.at[0].set(0.0)  # padding_idx=0 row is zero
    params["embedding"] = emb

    dims = [embedding_dim * seq_len] + list(hidden_dims) + [output_dim]
    linears = []
    for i in range(len(dims) - 1):
        fan_in, fan_out = dims[i], dims[i + 1]
        key, wk, bk = jax.random.split(key, 3)
        bound = 1.0 / jnp.sqrt(fan_in)
        # stored as (in, out) so forward is x @ w + b
        w = jax.random.uniform(wk, (fan_in, fan_out), jnp.float32, -bound, bound)
        b = jax.random.uniform(bk, (fan_out,), jnp.float32, -bound, bound)
        linears.append((w, b))
    params["linears"] = linears
    return params


def prepare_packed_params(params):
    """Zero-pad every layer's N (and hidden K) to the common lane width NP,
    stack weights along K into one bf16 buffer, biases into one f32 buffer.
    Layer-0 K is left unpadded so it matches the flattened activation width."""
    linears = params["linears"]
    NP = max(_round_up(w.shape[1], LANE) for w, _ in linears)
    ws, bs, offs = [], [], [0]
    for i, (w, b) in enumerate(linears):
        k, n = w.shape
        kp = k if i == 0 else NP   # hidden activations are NP wide after padding
        wp = jnp.zeros((kp, NP), jnp.float32).at[:k, :n].set(w).astype(jnp.bfloat16)
        bp = jnp.zeros((1, NP), jnp.float32).at[0, :n].set(b)
        ws.append(wp)
        bs.append(bp)
        offs.append(offs[-1] + kp)
    w_all = jnp.concatenate(ws, axis=0)   # (800+128+128, 128) bf16
    b_all = jnp.concatenate(bs, axis=0)   # (3, 128) f32
    return w_all, b_all, tuple(offs)


# ---------------------------------------------------------------------------
# Forward pass (eval mode: Dropout is identity)
# ---------------------------------------------------------------------------
@functools.partial(jax.jit, static_argnames=("row_offsets", "output_dim"))
def mlp_classifier_forward(embedding, w_all, b_all, text, *,
                           row_offsets, output_dim: int):
    # text: (B, SEQ) int32
    B, S = text.shape
    E = embedding.shape[1]
    # TODO(synk): embedding gather + flatten stay as plain-JAX glue (XLA gather).
    embedded = jnp.take(embedding, text, axis=0)                   # (B, S, E) f32
    flattened = embedded.reshape(B, S * E).astype(jnp.bfloat16)    # (B, S*E) bf16

    out_pad = fused_mlp_pallas(flattened, w_all, b_all, row_offsets)  # (B, NP) f32
    return out_pad[:, :output_dim]                                    # (B, output_dim)


# Pure-JAX f32 reference (for a sanity check only).
def mlp_classifier_reference(params, text):
    x = jnp.take(params["embedding"], text, axis=0).reshape(text.shape[0], -1)
    n = len(params["linears"])
    for i, (w, b) in enumerate(params["linears"]):
        x = x @ w + b
        if i < n - 1:
            x = jnp.maximum(x, 0.0)
    return x


if __name__ == "__main__":
    # Small config consistent with the module; seq_len is fixed to 100 by the
    # module definition (input_dim = embedding_dim * 100).
    VOCAB_SIZE = 50
    EMBEDDING_DIM = 8
    HIDDEN_DIMS = [32, 16]
    OUTPUT_DIM = 4
    SEQ_LEN = 100
    BATCH = 2

    key = jax.random.PRNGKey(0)
    pkey, dkey = jax.random.split(key)

    params = init_params(pkey, VOCAB_SIZE, EMBEDDING_DIM,
                         HIDDEN_DIMS, OUTPUT_DIM, SEQ_LEN)
    w_all, b_all, row_offsets = prepare_packed_params(params)
    text = jax.random.randint(dkey, (BATCH, SEQ_LEN), 0, VOCAB_SIZE, dtype=jnp.int32)

    logits = mlp_classifier_forward(params["embedding"], w_all, b_all, text,
                                    row_offsets=row_offsets, output_dim=OUTPUT_DIM)
    logits = jax.block_until_ready(logits)
    assert logits.shape == (BATCH, OUTPUT_DIM), logits.shape

    # Sanity check vs f32 reference (loose tolerance for the bf16 MXU path).
    ref = jax.block_until_ready(mlp_classifier_reference(params, text))
    assert jnp.allclose(logits, ref, atol=5e-2, rtol=5e-2), (logits, ref)

    print("KERNEL_OK")
</pallas_src>

<mosaic_0001>
module attributes {stable_mosaic.version = 11 : i64} {
  func.func @_fused_mlp_kernel(%arg0: memref<2x800xbf16, #tpu.memory_space<vmem>>, %arg1: memref<1056x128xbf16, #tpu.memory_space<vmem>>, %arg2: memref<3x128xf32, #tpu.memory_space<vmem>>, %arg3: memref<2x128xf32, #tpu.memory_space<vmem>>) attributes {dimension_semantics = [], scalar_prefetch = 0 : i64, scratch_operands = 0 : i64, tpu.core_type = #tpu.core_type<tc>} {
    %c0 = arith.constant 0 : index
    %c0_0 = arith.constant 0 : index
    %0 = vector.load %arg2[%c0, %c0_0] : memref<3x128xf32, #tpu.memory_space<vmem>>, vector<3x128xf32>
    %c0_1 = arith.constant 0 : index
    %c0_2 = arith.constant 0 : index
    %1 = vector.load %arg0[%c0_1, %c0_2] : memref<2x800xbf16, #tpu.memory_space<vmem>>, vector<2x800xbf16>
    %c0_3 = arith.constant 0 : index
    %c0_4 = arith.constant 0 : index
    %2 = vector.load %arg1[%c0_3, %c0_4] : memref<1056x128xbf16, #tpu.memory_space<vmem>>, vector<800x128xbf16>
    %cst = arith.constant dense<0.000000e+00> : vector<2x128xf32>
    %3 = tpu.matmul %1, %2, %cst {dimension_numbers = #tpu.dot_dimension_numbers<[1], [0], [0], [1], [0, 0, 1, 1], [], []>} : vector<2x800xbf16>, vector<800x128xbf16>, vector<2x128xf32> -> vector<2x128xf32>
    %4 = vector.extract_strided_slice %0 {offsets = [0, 0], sizes = [1, 128], strides = [1, 1]} : vector<3x128xf32> to vector<1x128xf32>
    %5 = vector.broadcast %4 : vector<1x128xf32> to vector<2x128xf32>
    %6 = arith.addf %3, %5 : vector<2x128xf32>
    %cst_5 = arith.constant 0.000000e+00 : f32
    %7 = vector.broadcast %cst_5 : f32 to vector<2x128xf32>
    %8 = arith.maximumf %6, %7 : vector<2x128xf32>
    %9 = arith.truncf %8 : vector<2x128xf32> to vector<2x128xbf16>
    %c800 = arith.constant 800 : index
    %c0_6 = arith.constant 0 : index
    %10 = vector.load %arg1[%c800, %c0_6] : memref<1056x128xbf16, #tpu.memory_space<vmem>>, vector<128x128xbf16>
    %cst_7 = arith.constant dense<0.000000e+00> : vector<2x128xf32>
    %11 = tpu.matmul %9, %10, %cst_7 {dimension_numbers = #tpu.dot_dimension_numbers<[1], [0], [0], [1], [0, 0, 1, 1], [], []>} : vector<2x128xbf16>, vector<128x128xbf16>, vector<2x128xf32> -> vector<2x128xf32>
    %12 = vector.extract_strided_slice %0 {offsets = [1, 0], sizes = [1, 128], strides = [1, 1]} : vector<3x128xf32> to vector<1x128xf32>
    %13 = vector.broadcast %12 : vector<1x128xf32> to vector<2x128xf32>
    %14 = arith.addf %11, %13 : vector<2x128xf32>
    %cst_8 = arith.constant 0.000000e+00 : f32
    %15 = vector.broadcast %cst_8 : f32 to vector<2x128xf32>
    %16 = arith.maximumf %14, %15 : vector<2x128xf32>
    %17 = arith.truncf %16 : vector<2x128xf32> to vector<2x128xbf16>
    %c928 = arith.constant 928 : index
    %c0_9 = arith.constant 0 : index
    %18 = vector.load %arg1[%c928, %c0_9] : memref<1056x128xbf16, #tpu.memory_space<vmem>>, vector<128x128xbf16>
    %cst_10 = arith.constant dense<0.000000e+00> : vector<2x128xf32>
    %19 = tpu.matmul %17, %18, %cst_10 {dimension_numbers = #tpu.dot_dimension_numbers<[1], [0], [0], [1], [0, 0, 1, 1], [], []>} : vector<2x128xbf16>, vector<128x128xbf16>, vector<2x128xf32> -> vector<2x128xf32>
    %20 = vector.extract_strided_slice %0 {offsets = [2, 0], sizes = [1, 128], strides = [1, 1]} : vector<3x128xf32> to vector<1x128xf32>
    %21 = vector.broadcast %20 : vector<1x128xf32> to vector<2x128xf32>
    %22 = arith.addf %19, %21 : vector<2x128xf32>
    %c0_11 = arith.constant 0 : index
    %c0_12 = arith.constant 0 : index
    %23 = vector.load %arg3[%c0_11, %c0_12] : memref<2x128xf32, #tpu.memory_space<vmem>>, vector<2x128xf32>
    tpu.vector_store %arg3[%c0_11, %c0_12], %22 {strides = array<i32>} : memref<2x128xf32, #tpu.memory_space<vmem>>, vector<2x128xf32>,
    return
  }
}

</mosaic_0001>

<bundles_post_ra>
// kernel: mlp_classifier_forward.1
= control target key start
LH: loop header
LB: loop body
LE: loop exit
PB: predicated region body
PF: predicated region fallthrough
CT: control target
= control target key end

     0   :  { %s1291_s0 = inlined_call_operand.vmem [shape: bf16[2,800], index: 0, kind: input, shape index: {}]   ;;  %s1292_s1 = inlined_call_operand.vmem [shape: bf16[1056,128], index: 1, kind: input, shape index: {}]   ;;  %s1293_s2 = inlined_call_operand.vmem [shape: f32[3,128], index: 2, kind: input, shape index: {}]   ;;  %s1294_s3 = inlined_call_operand.hbm [shape: f32[2,128], index: 3, kind: output, shape index: {}]  }
   0x1   :  { %v977_v0 = vld [vmem:[%s1292_s1 + $0x38] sm:$0xff]  ;;  %v976_v3 = vld [vmem:[%s1292_s1 + $0x30] sm:$0xff]  ;;  %v975_v8 = vld [vmem:[%s1292_s1 + $0x28] sm:$0xff] }
   0x2   :  { %v985_v1 = vld [vmem:[%s1292_s1 + $0x78] sm:$0xff]  ;;  %437 = vmatpush.bf16.msra.mxu0 %v977_v0  ;;  %v984_v4 = vld [vmem:[%s1292_s1 + $0x70] sm:$0xff]  ;;  %v983_v9 = vld [vmem:[%s1292_s1 + $0x68] sm:$0xff] }
   0x3   :  { %v993_v2 = vld [vmem:[%s1292_s1 + $0xb8] sm:$0xff]  ;;  %450 = vmatpush.bf16.msra.mxu1 %v985_v1  ;;  %v992_v5 = vld [vmem:[%s1292_s1 + $0xb0] sm:$0xff]  ;;  %v991_v10 = vld [vmem:[%s1292_s1 + $0xa8] sm:$0xff] }
   0x4   :  { %463 = vmatpush.bf16.msra.mxu2 %v993_v2  ;;  %v1001_v6 = vld [vmem:[%s1292_s1 + $0xf8] sm:$0xff]  ;;  %v1000_v7 = vld [vmem:[%s1292_s1 + $0xf0] sm:$0xff]  ;;  %v999_v11 = vld [vmem:[%s1292_s1 + $0xe8] sm:$0xff] }
   0x5   :  { %476 = vmatpush.bf16.msra.mxu3 %v1001_v6  ;;  %v974_v12 = vld [vmem:[%s1292_s1 + $0x20] sm:$0xff]  ;;  %v973_v17 = vld [vmem:[%s1292_s1 + $0x18] sm:$0xff] }
   0x6   :  { %438 = vmatpush.bf16.msra.mxu0 %v976_v3  ;;  %v982_v13 = vld [vmem:[%s1292_s1 + $0x60] sm:$0xff]  ;;  %v981_v18 = vld [vmem:[%s1292_s1 + $0x58] sm:$0xff] }
   0x7   :  { %451 = vmatpush.bf16.msra.mxu1 %v984_v4  ;;  %v990_v14 = vld [vmem:[%s1292_s1 + $0xa0] sm:$0xff] }
   0x8   :  { %464 = vmatpush.bf16.msra.mxu2 %v992_v5  ;;  %v17_v15 = vld [vmem:[%s1291_s0] sm:$0x7f] }
   0x9   :  { %477 = vmatpush.bf16.msra.mxu3 %v1000_v7  ;;  %120 = vst [vmem:[#allocation1] ss:$9 sm:$0xff] %v17_v15  ;;  %v998_v16 = vld [vmem:[%s1292_s1 + $0xe0] sm:$0xff] }
   0xa   :  { %439 = vmatpush.bf16.msra.mxu0 %v975_v8 }
   0xb   :  { %452 = vmatpush.bf16.msra.mxu1 %v983_v9 }
   0xc   :  { %465 = vmatpush.bf16.msra.mxu2 %v991_v10 }
   0xd   :  { %478 = vmatpush.bf16.msra.mxu3 %v999_v11 }
   0xe   :  { %440 = vmatpush.bf16.msra.mxu0 %v974_v12 }
   0xf   :  { %453 = vmatpush.bf16.msra.mxu1 %v982_v13 }
  0x10   :  { %8 = vsyncpa [#allocation3], 0  ;;  %466 = vmatpush.bf16.msra.mxu2 %v990_v14  ;;  %v989_v19 = vld [vmem:[%s1292_s1 + $0x98] sm:$0xff]  ;;  %v972_v21 = vld [vmem:[%s1292_s1 + $0x10] sm:$0xff]  ;;  %vm434_vm0 = vcmask 261120   ;;  %s1063_s8 = smov [#allocation2]  }
  0x11   :  { %479 = vmatpush.bf16.msra.mxu3 %v998_v16  ;;  %v997_v20 = vld [vmem:[%s1292_s1 + $0xd8] sm:$0xff]  ;;  %v980_v22 = vld [vmem:[%s1292_s1 + $0x50] sm:$0xff]  ;;  %v971_v25 = vld [vmem:[%s1292_s1 + $0x8] sm:$0xff]  ;;  %s694_s9 = sshll.u32 %s1063_s8, 4  ;;  %s696_s12 = sshll.u32 %s1294_s3, 4  ;;  %s695_s9 = int_to_ptr.vmem [resolvable:$true] %s694_s9  ;;  %s697_s12 = int_to_ptr.hbm [resolvable:$true] %s696_s12 }
  0x12   :  { %441 = vmatpush.bf16.msra.mxu0 %v973_v17  ;;  %v988_v23 = vld [vmem:[%s1292_s1 + $0x90] sm:$0xff]  ;;  %v979_v26 = vld [vmem:[%s1292_s1 + $0x48] sm:$0xff]  ;;  %v970_v29 = vld [vmem:[%s1292_s1] sm:$0xff] }
  0x13   :  { %454 = vmatpush.bf16.msra.mxu1 %v981_v18  ;;  %v996_v24 = vld [vmem:[%s1292_s1 + $0xd0] sm:$0xff]  ;;  %v987_v27 = vld [vmem:[%s1292_s1 + $0x88] sm:$0xff]  ;;  %v978_v30 = vld [vmem:[%s1292_s1 + $0x40] sm:$0xff] }
  0x14   :  { %467 = vmatpush.bf16.msra.mxu2 %v989_v19  ;;  %v995_v28 = vld [vmem:[%s1292_s1 + $0xc8] sm:$0xff]  ;;  %v1009_v31 = vld [vmem:[%s1292_s1 + $0x138] sm:$0xff]  ;;  %v986_v33 = vld [vmem:[%s1292_s1 + $0x80] sm:$0xff] }
  0x15   :  { %480 = vmatpush.bf16.msra.mxu3 %v997_v20  ;;  %v1017_v32 = vld [vmem:[%s1292_s1 + $0x178] sm:$0xff]  ;;  %v994_v34 = vld [vmem:[%s1292_s1 + $0xc0] sm:$0xff]  ;;  %v122_v36 = vld [vmem:[#allocation1 + $0x9] sm:$0xff] }
  0x16   :  { %442 = vmatpush.bf16.msra.mxu0 %v972_v21  ;;  %v121_v35 = vld [vmem:[#allocation1] sm:$0xff]  ;;  %v1019_v37 = vld [vmem:[%s1292_s1 + $0x188] sm:$0xff]  ;;  %v1008_v38 = vld [vmem:[%s1292_s1 + $0x130] sm:$0xff] }
  0x17   :  { %455 = vmatpush.bf16.msra.mxu1 %v980_v22  ;;  %v1016_v39 = vld [vmem:[%s1292_s1 + $0x170] sm:$0xff]  ;;  %v124_v41 = vld [vmem:[#allocation1 + $0x1b] sm:$0xff]  ;;  %v1007_v43 = vld [vmem:[%s1292_s1 + $0x128] sm:$0xff] }
  0x18   :  { %468 = vmatpush.bf16.msra.mxu2 %v988_v23  ;;  %v123_v40 = vld [vmem:[#allocation1 + $0x12] sm:$0xff]  ;;  %v1018_v42 = vld [vmem:[%s1292_s1 + $0x180] sm:$0xff]  ;;  %v1015_v44 = vld [vmem:[%s1292_s1 + $0x168] sm:$0xff] }
  0x19   :  { %481 = vmatpush.bf16.msra.mxu3 %v996_v24  ;;  %v1006_v45 = vld [vmem:[%s1292_s1 + $0x120] sm:$0xff]  ;;  %v1005_v47 = vld [vmem:[%s1292_s1 + $0x118] sm:$0xff]  ;;  %v1004_v49 = vld [vmem:[%s1292_s1 + $0x110] sm:$0xff] }
  0x1a   :  { %443 = vmatpush.bf16.msra.mxu0 %v971_v25  ;;  %v1014_v46 = vld [vmem:[%s1292_s1 + $0x160] sm:$0xff]  ;;  %v1013_v48 = vld [vmem:[%s1292_s1 + $0x158] sm:$0xff]  ;;  %v1012_v50 = vld [vmem:[%s1292_s1 + $0x150] sm:$0xff] }
  0x1b   :  { %456 = vmatpush.bf16.msra.mxu1 %v979_v26  ;;  %v127_v51 = vld [vmem:[#allocation1 + $0x36] sm:$0xff]  ;;  %v1003_v52 = vld [vmem:[%s1292_s1 + $0x108] sm:$0xff]  ;;  %v1002_v54 = vld [vmem:[%s1292_s1 + $0x100] sm:$0xff] }
  0x1c   :  { %469 = vmatpush.bf16.msra.mxu2 %v987_v27  ;;  %v1011_v53 = vld [vmem:[%s1292_s1 + $0x148] sm:$0xff]  ;;  %v1010_v55 = vld [vmem:[%s1292_s1 + $0x140] sm:$0xff]  ;;  %v1025_v60 = vld [vmem:[%s1292_s1 + $0x1b8] sm:$0xff] }
  0x1d   :  { %482 = vmatpush.bf16.msra.mxu3 %v995_v28  ;;  %v125_v56 = vld [vmem:[#allocation1 + $0x24] sm:$0xff]  ;;  %v126_v57 = vld [vmem:[#allocation1 + $0x2d] sm:$0xff]  ;;  %v1021_v0 = vld [vmem:[%s1292_s1 + $0x198] sm:$0xff] }
  0x1e   :  { %444 = vmatpush.bf16.msra.mxu0 %v970_v29  ;;  %v1027_v58 = vld [vmem:[%s1292_s1 + $0x1c8] sm:$0xff]  ;;  %v1026_v59 = vld [vmem:[%s1292_s1 + $0x1c0] sm:$0xff]  ;;  %v1024_v61 = vld [vmem:[%s1292_s1 + $0x1b0] sm:$0xff] }
  0x1f   :  { %457 = vmatpush.bf16.msra.mxu1 %v978_v30  ;;  %v1023_v62 = vld [vmem:[%s1292_s1 + $0x1a8] sm:$0xff]  ;;  %v1022_v63 = vld [vmem:[%s1292_s1 + $0x1a0] sm:$0xff]  ;;  %v1020_v3 = vld [vmem:[%s1292_s1 + $0x190] sm:$0xff] }
  0x20   :  { %470 = vmatpush.bf16.msra.mxu2 %v986_v33  ;;  %v1035_v6 = vld [vmem:[%s1292_s1 + $0x208] sm:$0xff]  ;;  %v16_v7 = vld [vmem:[%s1293_s2] sm:$0x7]  ;;  %v1033_v12 = vld [vmem:[%s1292_s1 + $0x1f8] sm:$0xff] }
  0x21   :  { %445 = vmatmul.bf16.vlgmr.msra.gmra.mxu0 %v121_v35  ;;  %483 = vmatpush.bf16.msra.mxu3 %v994_v34  ;;  %v1034_v10 = vld [vmem:[%s1292_s1 + $0x200] sm:$0xff]  ;;  %v118_v11 = vperm.slane %v16_v7, 0  ;;  %v1032_v16 = vld [vmem:[%s1292_s1 + $0x1f0] sm:$0xff]  ;;  %v1031_v18 = vld [vmem:[%s1292_s1 + $0x1e8] sm:$0xff]  ;;  %v546_v35 = vperm.slane %v16_v7, 1 }
  0x22   :  { %489 = vmatpush.bf16.msrb.mxu0 %v1009_v31  ;;  %458 = vmatmul.bf16.vlgmr.msra.gmra.mxu1 %v122_v36  ;;  %v1030_v21 = vld [vmem:[%s1292_s1 + $0x1e0] sm:$0xff]  ;;  %v1029_v33 = vld [vmem:[%s1292_s1 + $0x1d8] sm:$0xff]  ;;  %v1028_v34 = vld [vmem:[%s1292_s1 + $0x1d0] sm:$0xff] }
  0x23   :  { %502 = vmatpush.bf16.msrb.mxu1 %v1017_v32  ;;  %471 = vmatmul.bf16.vlgmr.msra.gmra.mxu2 %v123_v40 }
  0x24   :  { %521 = vmatpush.bf16.msrb.mxu2 %v1019_v37  ;;  %484 = vmatmul.bf16.vlgmr.msra.gmra.mxu3 %v124_v41  ;;  %v626_v41 = vperm.slane %v16_v7, 2 }
  0x25   :  { %595 = vmatpush.bf16.msrb.mxu3 %v1027_v58 }
  0x26   :  { %490 = vmatpush.bf16.msrb.mxu0 %v1008_v38 }
  0x27   :  { %503 = vmatpush.bf16.msrb.mxu1 %v1016_v39 }
  0x28   :  { %522 = vmatpush.bf16.msrb.mxu2 %v1018_v42 }
  0x29   :  { %596 = vmatpush.bf16.msrb.mxu3 %v1026_v59 }
  0x2a   :  { %491 = vmatpush.bf16.msrb.mxu0 %v1007_v43 }
  0x2b   :  { %504 = vmatpush.bf16.msrb.mxu1 %v1015_v44 }
  0x2c   :  { %675 = vmatpush.bf16.msra.mxu2 %v1035_v6 }
  0x2d   :  { %597 = vmatpush.bf16.msrb.mxu3 %v1025_v60 }
  0x2e   :  { %492 = vmatpush.bf16.msrb.mxu0 %v1006_v45 }
  0x2f   :  { %505 = vmatpush.bf16.msrb.mxu1 %v1014_v46 }
  0x30   :  { %676 = vmatpush.bf16.msra.mxu2 %v1034_v10 }
  0x31   :  { %598 = vmatpush.bf16.msrb.mxu3 %v1024_v61 }
  0x32   :  { %493 = vmatpush.bf16.msrb.mxu0 %v1005_v47 }
  0x33   :  { %506 = vmatpush.bf16.msrb.mxu1 %v1013_v48  ;;  %905 = vmatmul.msk.bf16.vlgmr.msrb.gmra.mxu2 %vm434_vm0, %v127_v51 }
  0x34   :  { %677 = vmatpush.bf16.msra.mxu2 %v1033_v12 }
  0x35   :  { %599 = vmatpush.bf16.msrb.mxu3 %v1023_v62 }
  0x36   :  { %494 = vmatpush.bf16.msrb.mxu0 %v1004_v49 }
  0x37   :  { %507 = vmatpush.bf16.msrb.mxu1 %v1012_v50 }
  0x38   :  { %678 = vmatpush.bf16.msra.mxu2 %v1032_v16 }
  0x39   :  { %600 = vmatpush.bf16.msrb.mxu3 %v1022_v63 }
  0x3a   :  { %495 = vmatpush.bf16.msrb.mxu0 %v1003_v52 }
  0x3b   :  { %508 = vmatpush.bf16.msrb.mxu1 %v1011_v53 }
  0x3c   :  { %679 = vmatpush.bf16.msra.mxu2 %v1031_v18 }
  0x3d   :  { %601 = vmatpush.bf16.msrb.mxu3 %v1021_v0 }
  0x3e   :  { %496 = vmatpush.bf16.msrb.mxu0 %v1002_v54 }
  0x3f   :  { %509 = vmatpush.bf16.msrb.mxu1 %v1010_v55 }
  0x40   :  { %680 = vmatpush.bf16.msra.mxu2 %v1030_v21 }
  0x41   :  { %497 = vmatmul.bf16.vlgmr.msrb.gmra.mxu0 %v125_v56  ;;  %602 = vmatpush.bf16.msrb.mxu3 %v1020_v3 }
  0x42   :  { %510 = vmatmul.bf16.vlgmr.msrb.gmra.mxu1 %v126_v57 }
  0x44   :  { %681 = vmatpush.bf16.msra.mxu2 %v1029_v33 }
  0x48   :  { %682 = vmatpush.bf16.msra.mxu2 %v1028_v34 }
  0x9e   :  { %v446_v1 = vpop.f32.mrf.mxu0 }
  0x9f   :  { %v459_v2 = vpop.f32.mrf.mxu1  ;;  %v447_v13 = vadd.f32 %v446_v1, %v118_v11 }
  0xa1   :  { %v460_v17 = vadd.f32 %v459_v2, %v447_v13 }
  0xa6   :  { %v448_v4 = vpop.f32.mrf.mxu0  ;;  %v472_v8 = vpop.f32.mrf.mxu2 }
  0xa7   :  { %v461_v5 = vpop.f32.mrf.mxu1  ;;  %v485_v9 = vpop.f32.mrf.mxu3  ;;  %v473_v19 = vadd.f32 %v472_v8, %v460_v17 }
  0xa9   :  { %v486_v22 = vadd.f32 %v485_v9, %v473_v19 }
  0xae   :  { %v474_v14 = vpop.f32.mrf.mxu2 }
  0xaf   :  { %v487_v15 = vpop.f32.mrf.mxu3 }
  0xb6   :  { %v524_v20 = vpop.f32.mrf.mxu2 }
  0xbe   :  { %v498_v23 = vpop.f32.mrf.mxu0  ;;  %v526_v27 = vpop.f32.mrf.mxu2 }
  0xbf   :  { %v511_v24 = vpop.f32.mrf.mxu1  ;;  %v499_v25 = vadd.f32 %v498_v23, %v486_v22 }
  0xc1   :  { %v512_v26 = vadd.f32 %v511_v24, %v499_v25 }
  0xc3   :  { %v525_v28 = vadd.f32 %v524_v20, %v512_v26 }
  0xc5   :  { %v528_v29 = vmax.f32 %v525_v28, 0.0 }
  0xc6   :  { %v500_v30 = vpop.f32.mrf.mxu0 }
  0xc7   :  { %v513_v31 = vpop.f32.mrf.mxu1  ;;  %v529_v32 = vpack.c.bf16 %v528_v29, %v528_v29 }
  0xc9   :  { %603 = vmatmul.bf16.vlgmr.msrb.gmra.mxu3 %v529_v32 }
 0x14c   :  { %v604_v36 = vpop.f32.mrf.mxu3 }
 0x14d   :  { %v605_v37 = vadd.f32 %v604_v36, %v546_v35 }
 0x14f   :  { %v608_v38 = vmax.f32 %v605_v37, 0.0 }
 0x151   :  { %v609_v39 = vpack.c.bf16 %v608_v38, %v608_v38 }
 0x153   :  { %683 = vmatmul.bf16.vlgmr.msra.gmra.mxu2 %v609_v39 }
 0x154   :  { %v606_v40 = vpop.f32.mrf.mxu3 }
 0x1d6   :  { %v684_v42 = vpop.f32.mrf.mxu2 }
 0x1d7   :  { %v685_v43 = vadd.f32 %v684_v42, %v626_v41 }
 0x1d9   :  { %688 = vst [vmem:[#allocation2] sm:$0x3] %v685_v43 }
 0x1da   :  { %699 = dma.vmem_to_hbm [thread:$0]  %s695_s9, 32, %s697_s12, [#allocation3]  }
 0x1de   :  { %v686_v44 = vpop.f32.mrf.mxu2 }
 0x1df   :  { %1061 = dma.done.wait [#allocation3], 32  }
 0x1e0   :  { %1062 = vsyncadd [#allocation3], 4294967264 }
 0x1e1   :  { %704 = vsyncpa [#allocation3], 1 }

</bundles_post_ra>
